<compile_context>
chip_gen: v5e
topology: v5e:2x2
jax: 0.10.0
libtpu: 0.0.40
codegen_flags: <defaults>
</compile_context>

<pallas_src>
import jax
import jax.numpy as jnp
import numpy as np
from jax.experimental import pallas as pl
from jax.experimental.pallas import tpu as pltpu


# ----------------------------------------------------------------------------
# Kernel bodies
# ----------------------------------------------------------------------------
def _cam_small_kernel(w_ref, x_ref, cam_ref, cls_ref):
    """Whole problem in one invocation (tiny feature maps).

    w_ref  : (K, C4)     f32   classifier weight
    x_ref  : (B, C4, HW) f32   stage-4 features (spatial on lanes)
    cam_ref: (B, K, HW)  f32   cam = conv1x1(_x4, w)
    cls_ref: (B, K, 1)   f32   spatial SUM of cam (wrapper divides by HW)
    """
    w = w_ref[...].astype(jnp.bfloat16)            # in-kernel cast: no extra HBM pass
    for b in range(x_ref.shape[0]):                # B is small & static here
        xb = x_ref[b].astype(jnp.bfloat16)         # (C4, HW)
        cam_b = jnp.dot(w, xb, preferred_element_type=jnp.float32)   # MXU, f32 acc
        cam_ref[b] = cam_b.astype(cam_ref.dtype)
        cls_ref[b] = jnp.sum(cam_b, axis=-1, keepdims=True)


def _cam_tiled_kernel(w_ref, x_ref, cam_ref, cls_ref):
    """One (batch, hw-tile) grid step.

    w_ref  : (K, C4)          f32  (same block every step)
    x_ref  : (1, C4, hw_tile) f32
    cam_ref: (1, K, hw_tile)  f32  (distinct block every step -> lane-dense stores)
    cls_ref: (1, K, 1)        f32  (same block across the hw axis -> VMEM-resident
                                    accumulator; hw grid axis is "arbitrary")
    """
    t = pl.program_id(1)

    @pl.when(t == 0)
    def _():
        cls_ref[...] = jnp.zeros_like(cls_ref)

    w = w_ref[...].astype(jnp.bfloat16)
    x = x_ref[0].astype(jnp.bfloat16)                               # (C4, hw_tile)
    cam = jnp.dot(w, x, preferred_element_type=jnp.float32)         # (K, hw_tile)
    cam_ref[0] = cam.astype(cam_ref.dtype)
    cls_ref[0] += jnp.sum(cam, axis=-1, keepdims=True)              # partial spatial sum


# ----------------------------------------------------------------------------
# Wrapper
# ----------------------------------------------------------------------------
_SMALL_X_BYTES_LIMIT = 2 * 1024 * 1024      # whole-x single-invocation path threshold
_VMEM_LIMIT_BYTES = 32 * 1024 * 1024        # <= scoped default everywhere (v7x phys 64 MiB)


def _pick_hw_tile(hw_pad, max_tile=4096):
    """Largest lane tile <= max_tile that is a multiple of 128 and divides hw_pad.

    Per-step double-buffered VMEM with C4=64 at tile=4096:
      2*(64*4096*4B) + 2*(K*4096*4B) ~= 2.1 MiB (K=1) -- far under every generation's
      budget, including v7x's 64 MiB physical / 32 MiB scoped-default VMEM.
    """
    t = min(max_tile, hw_pad)
    t -= t % 128
    t = max(t, 128)
    while hw_pad % t != 0:
        t -= 128
    return t


def camnet_head(x4_chw, w_kc, *, hw_tile=None, small_limit=_SMALL_X_BYTES_LIMIT):
    """Fused CAM + GAP-classifier head.

    x4_chw : (B, C4, HW) float32 stage-4 features (NCHW with H*W flattened onto lanes)
    w_kc   : (K, C4)     float32 classifier weight (Conv2d 1x1, bias=False)

    Returns:
      cam    : (B, K, HW) float32  == F.conv2d(_x4, classifier.weight)
      cls_x4 : (B, K)     float32  == classifier(adaptive_avg_pool2d(_x4, 1))
               (derived as cam's spatial mean; identical ONLY because the classifier is
                linear with bias=False -- do not reuse if a bias/nonlinearity is added)
    """
    B, C4, HW = x4_chw.shape
    K = w_kc.shape[0]
    x4_chw = x4_chw.astype(jnp.float32)
    w_kc = w_kc.astype(jnp.float32)
    flops = 2 * B * K * C4 * HW

    # ---- small path: one invocation, no grid -> no per-step pipeline overhead ----
    if B * C4 * HW * 4 <= small_limit:
        cost = pl.CostEstimate(
            flops=flops, transcendentals=0,
            bytes_accessed=4 * (K * C4 + B * C4 * HW + B * K * HW + B * K))
        cam, cls_sum = pl.pallas_call(
            _cam_small_kernel,
            out_shape=(jax.ShapeDtypeStruct((B, K, HW), jnp.float32),
                       jax.ShapeDtypeStruct((B, K, 1), jnp.float32)),
            compiler_params=pltpu.CompilerParams(vmem_limit_bytes=_VMEM_LIMIT_BYTES),
            cost_estimate=cost,
        )(w_kc, x4_chw)
        cls_x4 = cls_sum[:, :, 0] * (1.0 / HW)
        return cam, cls_x4

    # ---- tiled path ----
    # Pad HW up to a multiple of 128 so every cam store is lane-dense (unmasked vst)
    # and blocks stay bounded; zeros contribute nothing to the cls sum.
    HW_pad = ((HW + 127) // 128) * 128
    x_in = jnp.pad(x4_chw, ((0, 0), (0, 0), (0, HW_pad - HW))) if HW_pad != HW else x4_chw
    if hw_tile is None:
        hw_tile = _pick_hw_tile(HW_pad)
    assert hw_tile % 128 == 0 and HW_pad % hw_tile == 0
    n_hw = HW_pad // hw_tile

    # Explicit double-buffered VMEM budget (valid on v7x's 64 MiB part; do NOT retune
    # hw_tile against v5e/v6e's 128 MiB):  2*x_tile + 2*cam_tile + 2*w + 2*cls.
    vmem_per_step = (2 * C4 * hw_tile * 4 + 2 * K * hw_tile * 4
                     + 2 * K * C4 * 4 + 2 * K * 4)
    assert vmem_per_step <= 24 * 1024 * 1024, (
        f"hw_tile={hw_tile} needs ~{vmem_per_step / 2**20:.1f} MiB VMEM; shrink it")

    cost = pl.CostEstimate(
        flops=flops, transcendentals=0,
        bytes_accessed=4 * (B * n_hw * K * C4 + B * C4 * HW_pad + B * K * HW_pad + B * K))
    cam_pad, cls_sum = pl.pallas_call(
        _cam_tiled_kernel,
        out_shape=(jax.ShapeDtypeStruct((B, K, HW_pad), jnp.float32),
                   jax.ShapeDtypeStruct((B, K, 1), jnp.float32)),
        grid_spec=pltpu.PrefetchScalarGridSpec(
            num_scalar_prefetch=0,
            # batch axis "parallel" (v7x's 2 TensorCores split batches), hw axis
            # "arbitrary" (innermost; cls accumulates across it).
            grid=(B, n_hw),
            in_specs=[
                pl.BlockSpec((K, C4), lambda b, t: (0, 0)),
                pl.BlockSpec((1, C4, hw_tile), lambda b, t: (b, 0, t)),
            ],
            out_specs=[
                pl.BlockSpec((1, K, hw_tile), lambda b, t: (b, 0, t)),
                pl.BlockSpec((1, K, 1), lambda b, t: (b, 0, 0)),
            ],
        ),
        compiler_params=pltpu.CompilerParams(
            dimension_semantics=("parallel", "arbitrary"),
            vmem_limit_bytes=_VMEM_LIMIT_BYTES),
        cost_estimate=cost,
    )(w_kc, x_in)

    cam = cam_pad[:, :, :HW] if HW_pad != HW else cam_pad
    cls_x4 = cls_sum[:, :, 0] * (1.0 / HW)      # divide by the REAL HW (padding is zero)
    return cam, cls_x4


# ----------------------------------------------------------------------------
# Stand-in encoder (glue).
# TODO(synk): the real mix_transformer (SegFormer MiT) backbone is not reproducible from
# the given source file; stand-in = stride-s average pool + deterministic 1x1 channel
# projection per stage.  No attention maps are produced.
# ----------------------------------------------------------------------------
FEATURE_STRIDES = (4, 8, 16, 32)


def standin_encoder(x, proj_weights):
    """x: (B, 3, H, W) NCHW -> list of 4 NCHW feature maps + attn placeholder."""
    B, C, H, W = x.shape
    feats = []
    for s, w in zip(FEATURE_STRIDES, proj_weights):
        Hs, Ws = H // s, W // s
        xp = x.reshape(B, C, Hs, s, Ws, s).mean(axis=(3, 5))     # (B, C, Hs, Ws)
        feats.append(jnp.einsum("bchw,cd->bdhw", xp, w))         # (B, C_i, Hs, Ws)
    attns = []   # mix_transformer attention maps — not produced by the stand-in
    return feats, attns


# ----------------------------------------------------------------------------
# CamNet forward (pooling='gap')
# ----------------------------------------------------------------------------
def camnet_forward(x, proj_weights, w_cls_kc, num_classes, cam_only=False):
    feats, attns = standin_encoder(x, proj_weights)
    _x1, _x2, _x3, _x4 = feats                                   # NCHW
    B, C4, H4, W4 = _x4.shape
    K = num_classes - 1

    # Free NCHW view (no transpose): spatial axis goes to lanes.
    x4_chw = _x4.reshape(B, C4, H4 * W4)
    # One fused Pallas kernel: cam = conv1x1(_x4, w) and cls = classifier(GAP(_x4)).
    cam, cls_x4 = camnet_head(x4_chw, w_cls_kc)                  # (B,K,HW) f32, (B,K) f32

    if cam_only:
        cam_s4 = jax.lax.stop_gradient(cam.reshape(B, K, H4, W4))   # .detach(), NCHW
        return cls_x4, cam_s4
    return cls_x4, attns, _x4


# ----------------------------------------------------------------------------
# main
# ----------------------------------------------------------------------------
if __name__ == "__main__":
    key = jax.random.PRNGKey(0)

    # Image sized so the stride-32 stage-4 map is (8, 16) -> HW = 128 (one lane width).
    B, Cin, H, W = 2, 3, 256, 512
    num_classes = 2                        # classifier out-channels K = 1
    in_channels = (8, 16, 32, 64)          # stand-in encoder.embed_dims
    K = num_classes - 1
    C4 = in_channels[3]

    k_x, k_w, k_p1, k_p2, k_p3, k_p4, k_x2, k_w2 = jax.random.split(key, 8)
    x = jax.random.normal(k_x, (B, Cin, H, W), jnp.float32)
    proj_weights = [
        jax.random.normal(k, (Cin, c), jnp.float32) * 0.1
        for k, c in zip((k_p1, k_p2, k_p3, k_p4), in_channels)
    ]
    # classifier = Conv2d(C4, num_classes-1, 1, bias=False): weight (K, C4, 1, 1) -> (K, C4)
    w_cls = jax.random.normal(k_w, (K, C4), jnp.float32) / jnp.sqrt(float(C4))
    # attn_proj / Dropout2d: defined in __init__ but unused in forward() -> omitted.

    # ---- full forward, cam_only=True (small-path kernel) ----
    cls_x4, cam_s4 = camnet_forward(x, proj_weights, w_cls, num_classes, cam_only=True)
    cls_x4, cam_s4 = jax.block_until_ready((cls_x4, cam_s4))

    # ---- full forward, default path ----
    cls2, attns, x4 = camnet_forward(x, proj_weights, w_cls, num_classes, cam_only=False)
    cls2 = jax.block_until_ready(cls2)

    # ---- reference (numpy f32 accumulation on the SAME bf16-rounded inputs the kernel
    #      uses, so only f32 accumulation-order differences remain) ----
    feats_ref, _ = standin_encoder(x, proj_weights)
    x4_ref = feats_ref[3]                                             # (B, C4, H4, W4)
    x4_bf = np.asarray(x4_ref.astype(jnp.bfloat16).astype(jnp.float32))
    w_bf = np.asarray(w_cls.astype(jnp.bfloat16).astype(jnp.float32))
    cam_ref = np.einsum("bchw,kc->bkhw", x4_bf, w_bf)                 # (B, K, H4, W4)
    cls_ref = cam_ref.mean(axis=(2, 3))                               # (B, K)

    H4, W4 = H // 32, W // 32
    assert cls_x4.shape == (B, K) and cam_s4.shape == (B, K, H4, W4)
    np.testing.assert_allclose(np.asarray(cam_s4), cam_ref, rtol=1e-4, atol=1e-4)
    np.testing.assert_allclose(np.asarray(cls_x4), cls_ref, rtol=1e-4, atol=1e-4)
    np.testing.assert_allclose(np.asarray(cls2), cls_ref, rtol=1e-4, atol=1e-4)

    # ---- directly exercise the tiled-path kernel (HW padding, cls accumulation, K>1) ----
    B2, C4b, HW2, K2 = 2, 64, 1000, 3     # HW=1000 -> padded to 1024 -> 4 hw-tiles of 256
    x2 = jax.random.normal(k_x2, (B2, C4b, HW2), jnp.float32)
    w2 = jax.random.normal(k_w2, (K2, C4b), jnp.float32) / jnp.sqrt(float(C4b))
    cam2, cls2b = camnet_head(x2, w2, hw_tile=256, small_limit=0)
    cam2, cls2b = jax.block_until_ready((cam2, cls2b))

    x2_bf = np.asarray(x2.astype(jnp.bfloat16).astype(jnp.float32))
    w2_bf = np.asarray(w2.astype(jnp.bfloat16).astype(jnp.float32))
    cam2_ref = np.einsum("kc,bch->bkh", w2_bf, x2_bf)
    cls2_ref = cam2_ref.mean(axis=-1)
    assert cam2.shape == (B2, K2, HW2) and cls2b.shape == (B2, K2)
    np.testing.assert_allclose(np.asarray(cam2), cam2_ref, rtol=1e-4, atol=1e-4)
    np.testing.assert_allclose(np.asarray(cls2b), cls2_ref, rtol=1e-4, atol=1e-4)

    print("KERNEL_OK")
</pallas_src>

<mosaic_0001>
module attributes {stable_mosaic.version = 11 : i64} {
  func.func @_cam_small_kernel(%arg0: memref<1x64xf32, #tpu.memory_space<vmem>>, %arg1: memref<2x64x128xf32, #tpu.memory_space<vmem>>, %arg2: memref<2x1x128xf32, #tpu.memory_space<vmem>>, %arg3: memref<2x1x1xf32, #tpu.memory_space<vmem>>) attributes {dimension_semantics = [], scalar_prefetch = 0 : i64, scratch_operands = 0 : i64, tpu.core_type = #tpu.core_type<tc>} {
    %c0 = arith.constant 0 : index
    %c0_0 = arith.constant 0 : index
    %0 = vector.load %arg0[%c0, %c0_0] : memref<1x64xf32, #tpu.memory_space<vmem>>, vector<1x64xf32>
    %1 = arith.truncf %0 : vector<1x64xf32> to vector<1x64xbf16>
    %c0_1 = arith.constant 0 : index
    %c0_2 = arith.constant 0 : index
    %c0_3 = arith.constant 0 : index
    %2 = vector.load %arg1[%c0_1, %c0_2, %c0_3] : memref<2x64x128xf32, #tpu.memory_space<vmem>>, vector<1x64x128xf32>
    %3 = vector.shape_cast %2 : vector<1x64x128xf32> to vector<64x128xf32>
    %4 = arith.truncf %3 : vector<64x128xf32> to vector<64x128xbf16>
    %cst = arith.constant dense<0.000000e+00> : vector<1x128xf32>
    %5 = tpu.matmul %1, %4, %cst {dimension_numbers = #tpu.dot_dimension_numbers<[1], [0], [0], [1], [0, 0, 1, 1], [], []>} : vector<1x64xbf16>, vector<64x128xbf16>, vector<1x128xf32> -> vector<1x128xf32>
    %c0_4 = arith.constant 0 : index
    %c0_5 = arith.constant 0 : index
    %c0_6 = arith.constant 0 : index
    %6 = vector.load %arg2[%c0_4, %c0_5, %c0_6] : memref<2x1x128xf32, #tpu.memory_space<vmem>>, vector<1x1x128xf32>
    %7 = vector.shape_cast %6 : vector<1x1x128xf32> to vector<1x128xf32>
    %8 = vector.shape_cast %5 : vector<1x128xf32> to vector<1x1x128xf32>
    tpu.vector_store %arg2[%c0_4, %c0_5, %c0_6], %8 {strides = array<i32>} : memref<2x1x128xf32, #tpu.memory_space<vmem>>, vector<1x1x128xf32>,
    %cst_7 = arith.constant dense<0.000000e+00> : vector<1xf32>
    %9 = vector.multi_reduction <add>, %5, %cst_7 [1] : vector<1x128xf32> to vector<1xf32>
    %10 = vector.shape_cast %9 : vector<1xf32> to vector<1x1xf32>
    %c0_8 = arith.constant 0 : index
    %c0_9 = arith.constant 0 : index
    %c0_10 = arith.constant 0 : index
    %11 = vector.load %arg3[%c0_8, %c0_9, %c0_10] : memref<2x1x1xf32, #tpu.memory_space<vmem>>, vector<1x1x1xf32>
    %12 = vector.shape_cast %11 : vector<1x1x1xf32> to vector<1x1xf32>
    %13 = vector.shape_cast %10 : vector<1x1xf32> to vector<1x1x1xf32>
    tpu.vector_store %arg3[%c0_8, %c0_9, %c0_10], %13 {strides = array<i32>} : memref<2x1x1xf32, #tpu.memory_space<vmem>>, vector<1x1x1xf32>,
    %c1 = arith.constant 1 : index
    %c0_11 = arith.constant 0 : index
    %c0_12 = arith.constant 0 : index
    %14 = vector.load %arg1[%c1, %c0_11, %c0_12] : memref<2x64x128xf32, #tpu.memory_space<vmem>>, vector<1x64x128xf32>
    %15 = vector.shape_cast %14 : vector<1x64x128xf32> to vector<64x128xf32>
    %16 = arith.truncf %15 : vector<64x128xf32> to vector<64x128xbf16>
    %cst_13 = arith.constant dense<0.000000e+00> : vector<1x128xf32>
    %17 = tpu.matmul %1, %16, %cst_13 {dimension_numbers = #tpu.dot_dimension_numbers<[1], [0], [0], [1], [0, 0, 1, 1], [], []>} : vector<1x64xbf16>, vector<64x128xbf16>, vector<1x128xf32> -> vector<1x128xf32>
    %c1_14 = arith.constant 1 : index
    %c0_15 = arith.constant 0 : index
    %c0_16 = arith.constant 0 : index
    %18 = vector.load %arg2[%c1_14, %c0_15, %c0_16] : memref<2x1x128xf32, #tpu.memory_space<vmem>>, vector<1x1x128xf32>
    %19 = vector.shape_cast %18 : vector<1x1x128xf32> to vector<1x128xf32>
    %20 = vector.shape_cast %17 : vector<1x128xf32> to vector<1x1x128xf32>
    tpu.vector_store %arg2[%c1_14, %c0_15, %c0_16], %20 {strides = array<i32>} : memref<2x1x128xf32, #tpu.memory_space<vmem>>, vector<1x1x128xf32>,
    %cst_17 = arith.constant dense<0.000000e+00> : vector<1xf32>
    %21 = vector.multi_reduction <add>, %17, %cst_17 [1] : vector<1x128xf32> to vector<1xf32>
    %22 = vector.shape_cast %21 : vector<1xf32> to vector<1x1xf32>
    %c1_18 = arith.constant 1 : index
    %c0_19 = arith.constant 0 : index
    %c0_20 = arith.constant 0 : index
    %23 = vector.load %arg3[%c1_18, %c0_19, %c0_20] : memref<2x1x1xf32, #tpu.memory_space<vmem>>, vector<1x1x1xf32>
    %24 = vector.shape_cast %23 : vector<1x1x1xf32> to vector<1x1xf32>
    %25 = vector.shape_cast %22 : vector<1x1xf32> to vector<1x1x1xf32>
    tpu.vector_store %arg3[%c1_18, %c0_19, %c0_20], %25 {strides = array<i32>} : memref<2x1x1xf32, #tpu.memory_space<vmem>>, vector<1x1x1xf32>,
    return
  }
}

</mosaic_0001>

<bundles_post_ra>
// kernel: tpu_custom_call.1
= control target key start
LH: loop header
LB: loop body
LE: loop exit
PB: predicated region body
PF: predicated region fallthrough
CT: control target
= control target key end

     0   :  { %9 = vsyncpa [#allocation3], 0  ;;  %s270_s0 = inlined_call_operand.hbm [shape: f32[1,64], index: 0, kind: input, shape index: {}]   ;;  %s271_s1 = inlined_call_operand.hbm [shape: f32[2,64,128], index: 1, kind: input, shape index: {}]   ;;  %s272_s2 = inlined_call_operand.hbm [shape: f32[2,1,128], index: 2, kind: output, shape index: {0}]   ;;  %s273_s3 = inlined_call_operand.vmem [shape: f32[2,1,1], index: 3, kind: output, shape index: {1}]  }
   0x1   :  { %10 = vsyncpa [#allocation6], 0 }
   0x2   :  { %11 = vsyncpa [#allocation4], 0  ;;  %s17_s14 = sshll.u32 %s270_s0, 4  ;;  %s228_s15 = smov [#allocation2]   ;;  %s18_s14 = int_to_ptr.hbm [resolvable:$true] %s17_s14 }
   0x3   :  { %s19_s16 = sshll.u32 %s228_s15, 4  ;;  %s27_s19 = sshll.u32 %s271_s1, 4  ;;  %s20_s16 = int_to_ptr.vmem [resolvable:$true] %s19_s16  ;;  %s28_s19 = int_to_ptr.hbm [resolvable:$true] %s27_s19 }
   0x4   :  { %22 = dma.hbm_to_vmem [thread:$0]  %s18_s14, 16, %s20_s16, [#allocation3]  }
   0x5   :  { %s229_s20 = smov [#allocation5]   ;;  %s230_s22 = smov 128  }
   0x6   :  { %s29_s21 = sshll.u32 %s229_s20, 4  ;;  %s231_s23 = smov 8   ;;  %s30_s21 = int_to_ptr.vmem [resolvable:$true] %s29_s21 }
   0x7   :  { %35 = dma.hbm_to_vmem [thread:$0]  %s28_s19, 2048, %s30_s21, [#allocation6], %s230_s22, %s230_s22, %s231_s23  }
   0x8   :  { %222 = dma.done.wait [#allocation3], 16  }
   0x9   :  { %223 = vsyncadd [#allocation3], 4294967280 }
   0xa   :  { %224 = dma.done.wait [#allocation6], 2048  }
   0xb   :  { %225 = vsyncadd [#allocation6], 4294965248  ;;  %v53_v0 = vld [vmem:[#allocation5 + $0x30] sm:$0xff]  ;;  %v54_v1 = vld [vmem:[#allocation5 + $0x38] sm:$0xff]  ;;  %vm59_vm0 = vcmask 523264   ;;  %s232_s0 = smov [#allocation7]  }
   0xc   :  { %v90_v2 = vld [vmem:[#allocation5 + $0x70] sm:$0xff]  ;;  %v58_v3 = vpack.c.bf16 %v54_v1, %v53_v0  ;;  %v91_v4 = vld [vmem:[#allocation5 + $0x78] sm:$0xff]  ;;  %v51_v5 = vld [vmem:[#allocation5 + $0x20] sm:$0xff]  ;;  %s120_s1 = sshll.u32 %s232_s0, 4  ;;  %s122_s26 = sshll.u32 %s272_s2, 4  ;;  %vm77_vm1 = vcmask 1040384   ;;  %s121_s1 = int_to_ptr.vmem [resolvable:$true] %s120_s1  ;;  %s123_s26 = int_to_ptr.hbm [resolvable:$true] %s122_s26 }
   0xd   :  { %v52_v6 = vld [vmem:[#allocation5 + $0x28] sm:$0xff]  ;;  %v95_v7 = vpack.c.bf16 %v91_v4, %v90_v2  ;;  %v88_v8 = vld [vmem:[#allocation5 + $0x60] sm:$0xff]  ;;  %v49_v12 = vld [vmem:[#allocation5 + $0x10] sm:$0xff]  ;;  %s233_s27 = smov 16   ;;  %s234_s28 = smov 1   ;;  %vm81_vm2 = vcmask 0  }
   0xe   :  { %v89_v9 = vld [vmem:[#allocation5 + $0x68] sm:$0xff]  ;;  %67 = vmatpush.bf16.msra.mxu0 %v58_v3  ;;  %v57_v10 = vpack.c.bf16 %v52_v6, %v51_v5  ;;  %v50_v13 = vld [vmem:[#allocation5 + $0x18] sm:$0xff]  ;;  %v86_v14 = vld [vmem:[#allocation5 + $0x50] sm:$0xff] }
   0xf   :  { %100 = vmatpush.bf16.msra.mxu1 %v95_v7  ;;  %v94_v11 = vpack.c.bf16 %v89_v9, %v88_v8  ;;  %v87_v15 = vld [vmem:[#allocation5 + $0x58] sm:$0xff]  ;;  %v56_v16 = vpack.c.bf16 %v50_v13, %v49_v12  ;;  %v47_v18 = vld [vmem:[#allocation5] sm:$0xff]  ;;  %v48_v19 = vld [vmem:[#allocation5 + $0x8] sm:$0xff] }
  0x10   :  { %v93_v17 = vpack.c.bf16 %v87_v15, %v86_v14  ;;  %v84_v20 = vld [vmem:[#allocation5 + $0x40] sm:$0xff]  ;;  %v85_v21 = vld [vmem:[#allocation5 + $0x48] sm:$0xff]  ;;  %v55_v22 = vpack.c.bf16 %v48_v19, %v47_v18  ;;  %v45_v23 = vld [vmem:[#allocation2] sm:$0x1] }
  0x11   :  { %v92_v24 = vpack.c.bf16 %v85_v21, %v84_v20  ;;  %v46_v25 = vpack.c.bf16 %v45_v23, %v45_v23 }
  0x12   :  { %68 = vmatpush.bf16.msra.mxu0 %v57_v10 }
  0x13   :  { %101 = vmatpush.bf16.msra.mxu1 %v94_v11 }
  0x16   :  { %69 = vmatpush.bf16.msra.mxu0 %v56_v16 }
  0x17   :  { %102 = vmatpush.bf16.msra.mxu1 %v93_v17 }
  0x1a   :  { %70 = vmatpush.bf16.msra.mxu0 %v55_v22 }
  0x1b   :  { %103 = vmatpush.bf16.msra.mxu1 %v92_v24 }
  0x1d   :  { %140 = vmatmul.msk.bf16.vlgmr.msra.gmra.mxu0 %vm59_vm0, %v46_v25 }
  0x1e   :  { %141 = vmatmul.msk.bf16.vlgmr.msra.gmra.mxu1 %vm59_vm0, %v46_v25 }
  0x9a   :  { %v72_v26 = vpop.f32.mrf.mxu0 }
  0x9b   :  { %76 = vst [vmem:[#allocation7] sm:$0x1] %v72_v26  ;;  %v105_v27 = vpop.f32.mrf.mxu1  ;;  %v78_v28 = vsel %vm77_vm1, %v72_v26, 0.0 }
  0x9c   :  { %110 = vst [vmem:[#allocation7 + $0x1] sm:$0x1] %v105_v27  ;;  %79 = vadd.xlane.f32.xlu0 %v78_v28  ;;  %v111_v29 = vsel %vm77_vm1, %v105_v27, 0.0 }
  0x9d   :  { %128 = dma.vmem_to_hbm [thread:$0]  %s121_s1, 32, %s123_s26, [#allocation4], %s233_s27, %s233_s27, %s234_s28  }
  0xa2   :  { %v74_v30 = vpop.f32.mrf.mxu0 }
  0xa3   :  { %v107_v31 = vpop.f32.mrf.mxu1 }
  0xa4   :  { %112 = vadd.xlane.f32.xlu0 %v111_v29 }
 0x10f   :  { %v80_v32 = vpop.xlane.xlu0 %79 }
 0x110   :  { %82 = vst.msk [vmem:[%s273_s3] sm:$0x1] %vm81_vm2, %v80_v32 }
 0x117   :  { %v113_v33 = vpop.xlane.xlu0 %112 }
 0x118   :  { %142 = vst.msk [vmem:[%s273_s3 + $0x1] sm:$0x1] %vm81_vm2, %v113_v33 }
 0x119   :  { %226 = dma.done.wait [#allocation4], 32  }
 0x11a   :  { %227 = vsyncadd [#allocation4], 4294967264 }
 0x11b   :  { %137 = vsyncpa [#allocation3], 1 }
 0x11c   :  { %138 = vsyncpa [#allocation6], 1 }
 0x11d   :  { %139 = vsyncpa [#allocation4], 1 }

</bundles_post_ra>
